<compile_context>
chip_gen: v7x
topology: tpu7x:2x2x1
jax: 0.10.0
libtpu: 0.0.40
codegen_flags: <defaults>
</compile_context>

<pallas_src>
import jax
import jax.numpy as jnp
from jax.experimental import pallas as pl
from jax.experimental.pallas import tpu as pltpu


def _mlp_kernel(x_ref, w1_ref, b1_ref, w2_ref, b2_ref, o_ref):
    # Layer 1: bf16 x bf16 -> f32 accumulate on the MXU.
    h = jnp.dot(x_ref[...], w1_ref[...], preferred_element_type=jnp.float32)
    # Bias + ReLU in f32 on the VPU (b1 is (1, hidden) -> broadcasts over rows).
    h = jnp.maximum(h + b1_ref[...], 0.0)
    # Layer 2: downcast to bf16 only at the MXU feed; accumulate in f32.
    y = jnp.dot(h.astype(jnp.bfloat16), w2_ref[...],
                preferred_element_type=jnp.float32)
    y = y + b2_ref[...]
    o_ref[...] = y.astype(o_ref.dtype)


def mlp_forward(x, w1, b1, w2, b2, *, tm=128):
    """Pallas forward for the wrapped MLP.

    x:  [batch, d_in]   (any float dtype; cast to bf16 for the MXU)
    w1: [d_in, hidden]  bf16
    b1: [1, hidden]     f32
    w2: [hidden, d_out] bf16
    b2: [1, d_out]      f32
    returns f32 [batch, d_out]
    """
    batch, d_in = x.shape
    hidden = w1.shape[1]
    d_out = w2.shape[1]

    x_bf16 = x.astype(jnp.bfloat16)

    # Pad the batch up to a multiple of the M tile so the grid is exact.
    n_tiles = pl.cdiv(batch, tm)
    padded = n_tiles * tm
    if padded != batch:
        x_bf16 = jnp.pad(x_bf16, ((0, padded - batch), (0, 0)))

    out = pl.pallas_call(
        _mlp_kernel,
        out_shape=jax.ShapeDtypeStruct((padded, d_out), jnp.float32),
        grid_spec=pltpu.PrefetchScalarGridSpec(
            num_scalar_prefetch=0,
            grid=(n_tiles,),
            in_specs=[
                # x: one (tm, d_in) tile per grid step along the batch axis.
                pl.BlockSpec((tm, d_in), lambda i: (i, 0)),
                # Weights / biases: constant index map -> fetched once,
                # VMEM-resident across all batch tiles.
                pl.BlockSpec((d_in, hidden), lambda i: (0, 0)),
                pl.BlockSpec((1, hidden), lambda i: (0, 0)),
                pl.BlockSpec((hidden, d_out), lambda i: (0, 0)),
                pl.BlockSpec((1, d_out), lambda i: (0, 0)),
            ],
            out_specs=pl.BlockSpec((tm, d_out), lambda i: (i, 0)),
        ),
        compiler_params=pltpu.CompilerParams(
            # Batch tiles are independent -> shard across v7x's two TensorCores.
            dimension_semantics=("parallel",),
            vmem_limit_bytes=64 * 1024 * 1024,
        ),
    )(x_bf16, w1, b1, w2, b2)

    if padded != batch:
        out = out[:batch]
    return out


class BaseWrapper:
    """JAX equivalent of the PyTorch BaseWrapper: pure delegation."""

    def __init__(self, model):
        self.model = model

    def forward(self, x):
        return self.model(x)

    __call__ = forward

    def get_model(self):
        return self.model


if __name__ == "__main__":
    key = jax.random.PRNGKey(0)
    k_x, k_w1, k_b1, k_w2, k_b2 = jax.random.split(key, 5)

    # Lane-dense, MXU-friendly sizes: batch tiles of 128 rows, 128/256-wide features.
    batch, d_in, hidden, d_out = 256, 128, 256, 128

    x = jax.random.normal(k_x, (batch, d_in), dtype=jnp.float32)
    w1 = (jax.random.normal(k_w1, (d_in, hidden), dtype=jnp.float32) * 0.1
          ).astype(jnp.bfloat16)
    b1 = jax.random.normal(k_b1, (1, hidden), dtype=jnp.float32) * 0.1
    w2 = (jax.random.normal(k_w2, (hidden, d_out), dtype=jnp.float32) * 0.1
          ).astype(jnp.bfloat16)
    b2 = jax.random.normal(k_b2, (1, d_out), dtype=jnp.float32) * 0.1

    # The "model" being wrapped: a Pallas-backed 2-layer MLP.
    def model(inp):
        return mlp_forward(inp, w1, b1, w2, b2)

    wrapper = BaseWrapper(model)
    out = wrapper(x)
    jax.block_until_ready(out)

    # Reference in plain JAX using the SAME dtype discipline as the kernel:
    # bf16 MXU operands, f32 accumulation, f32 bias/ReLU, bf16 re-feed.
    x_bf16 = x.astype(jnp.bfloat16)
    h_ref = jnp.dot(x_bf16, w1, preferred_element_type=jnp.float32) + b1
    h_ref = jnp.maximum(h_ref, 0.0)
    y_ref = jnp.dot(h_ref.astype(jnp.bfloat16), w2,
                    preferred_element_type=jnp.float32) + b2

    assert out.shape == (batch, d_out)
    assert out.dtype == jnp.float32
    assert jnp.allclose(out, y_ref, atol=1e-2, rtol=1e-2)

    print("KERNEL_OK")
</pallas_src>

<mosaic_0001>
module attributes {stable_mosaic.version = 11 : i64} {
  func.func @_mlp_kernel(%arg0: i32, %arg1: memref<128x128xbf16, #tpu.memory_space<vmem>>, %arg2: memref<128x256xbf16, #tpu.memory_space<vmem>>, %arg3: memref<1x256xf32, #tpu.memory_space<vmem>>, %arg4: memref<256x128xbf16, #tpu.memory_space<vmem>>, %arg5: memref<1x128xf32, #tpu.memory_space<vmem>>, %arg6: memref<128x128xf32, #tpu.memory_space<vmem>>) attributes {dimension_semantics = [#tpu.dimension_semantics<parallel>], iteration_bounds = array<i64: 2>, scalar_prefetch = 0 : i64, scratch_operands = 0 : i64, tpu.core_type = #tpu.core_type<tc>, window_params = [{transform_indices = @transform_0, window_bounds = array<i64: 128, 128>}, {pipeline_mode = #tpu.pipeline_mode<synchronous>, transform_indices = @transform_1, window_bounds = array<i64: 128, 256>}, {pipeline_mode = #tpu.pipeline_mode<synchronous>, transform_indices = @transform_2, window_bounds = array<i64: 1, 256>}, {pipeline_mode = #tpu.pipeline_mode<synchronous>, transform_indices = @transform_3, window_bounds = array<i64: 256, 128>}, {pipeline_mode = #tpu.pipeline_mode<synchronous>, transform_indices = @transform_4, window_bounds = array<i64: 1, 128>}, {transform_indices = @transform_5, window_bounds = array<i64: 128, 128>}]} {
    %c0 = arith.constant 0 : index
    %c0_0 = arith.constant 0 : index
    %0 = vector.load %arg1[%c0, %c0_0] : memref<128x128xbf16, #tpu.memory_space<vmem>>, vector<128x128xbf16>
    %c0_1 = arith.constant 0 : index
    %c0_2 = arith.constant 0 : index
    %1 = vector.load %arg2[%c0_1, %c0_2] : memref<128x256xbf16, #tpu.memory_space<vmem>>, vector<128x256xbf16>
    %cst = arith.constant dense<0.000000e+00> : vector<128x256xf32>
    %2 = tpu.matmul %0, %1, %cst {dimension_numbers = #tpu.dot_dimension_numbers<[1], [0], [0], [1], [0, 0, 1, 1], [], []>} : vector<128x128xbf16>, vector<128x256xbf16>, vector<128x256xf32> -> vector<128x256xf32>
    %c0_3 = arith.constant 0 : index
    %c0_4 = arith.constant 0 : index
    %3 = vector.load %arg3[%c0_3, %c0_4] : memref<1x256xf32, #tpu.memory_space<vmem>>, vector<1x256xf32>
    %4 = vector.broadcast %3 : vector<1x256xf32> to vector<128x256xf32>
    %5 = arith.addf %2, %4 : vector<128x256xf32>
    %cst_5 = arith.constant 0.000000e+00 : f32
    %6 = vector.broadcast %cst_5 : f32 to vector<128x256xf32>
    %7 = arith.maximumf %5, %6 : vector<128x256xf32>
    %8 = arith.truncf %7 : vector<128x256xf32> to vector<128x256xbf16>
    %c0_6 = arith.constant 0 : index
    %c0_7 = arith.constant 0 : index
    %9 = vector.load %arg4[%c0_6, %c0_7] : memref<256x128xbf16, #tpu.memory_space<vmem>>, vector<256x128xbf16>
    %cst_8 = arith.constant dense<0.000000e+00> : vector<128x128xf32>
    %10 = tpu.matmul %8, %9, %cst_8 {dimension_numbers = #tpu.dot_dimension_numbers<[1], [0], [0], [1], [0, 0, 1, 1], [], []>} : vector<128x256xbf16>, vector<256x128xbf16>, vector<128x128xf32> -> vector<128x128xf32>
    %c0_9 = arith.constant 0 : index
    %c0_10 = arith.constant 0 : index
    %11 = vector.load %arg5[%c0_9, %c0_10] : memref<1x128xf32, #tpu.memory_space<vmem>>, vector<1x128xf32>
    %12 = vector.broadcast %11 : vector<1x128xf32> to vector<128x128xf32>
    %13 = arith.addf %10, %12 : vector<128x128xf32>
    %c0_11 = arith.constant 0 : index
    %c0_12 = arith.constant 0 : index
    %14 = vector.load %arg6[%c0_11, %c0_12] : memref<128x128xf32, #tpu.memory_space<vmem>>, vector<128x128xf32>
    tpu.vector_store %arg6[%c0_11, %c0_12], %13 {strides = array<i32>} : memref<128x128xf32, #tpu.memory_space<vmem>>, vector<128x128xf32>,
    return
  }
  func.func @transform_0(%arg0: i32) -> (i32, i32) {
    %c0_i32 = arith.constant 0 : i32
    %c0_i32_0 = arith.constant 0 : i32
    return %arg0, %c0_i32 : i32, i32
  }
  func.func @transform_1(%arg0: i32) -> (i32, i32) {
    %c0_i32 = arith.constant 0 : i32
    %c0_i32_0 = arith.constant 0 : i32
    %c0_i32_1 = arith.constant 0 : i32
    return %c0_i32, %c0_i32_0 : i32, i32
  }
  func.func @transform_2(%arg0: i32) -> (i32, i32) {
    %c0_i32 = arith.constant 0 : i32
    %c0_i32_0 = arith.constant 0 : i32
    %c0_i32_1 = arith.constant 0 : i32
    return %c0_i32, %c0_i32_0 : i32, i32
  }
  func.func @transform_3(%arg0: i32) -> (i32, i32) {
    %c0_i32 = arith.constant 0 : i32
    %c0_i32_0 = arith.constant 0 : i32
    %c0_i32_1 = arith.constant 0 : i32
    return %c0_i32, %c0_i32_0 : i32, i32
  }
  func.func @transform_4(%arg0: i32) -> (i32, i32) {
    %c0_i32 = arith.constant 0 : i32
    %c0_i32_0 = arith.constant 0 : i32
    %c0_i32_1 = arith.constant 0 : i32
    return %c0_i32, %c0_i32_0 : i32, i32
  }
  func.func @transform_5(%arg0: i32) -> (i32, i32) {
    %c0_i32 = arith.constant 0 : i32
    %c0_i32_0 = arith.constant 0 : i32
    return %arg0, %c0_i32 : i32, i32
  }
}

</mosaic_0001>

<bundles_post_ra>
// kernel: tpu_custom_call.1
= control target key start
LH: loop header
LB: loop body
LE: loop exit
PB: predicated region body
PF: predicated region fallthrough
CT: control target
= control target key end

     0   :  { %10 = vsyncpa [#allocation3], 0  ;;  %s1918_s0 = inlined_call_operand.hbm [shape: bf16[256,128], index: 0, kind: input, shape index: {}]   ;;  %s1919_s1 = inlined_call_operand.hbm [shape: bf16[128,256], index: 1, kind: input, shape index: {}]   ;;  %s1920_s2 = inlined_call_operand.hbm [shape: f32[1,256], index: 2, kind: input, shape index: {}]   ;;  %s1921_s3 = inlined_call_operand.hbm [shape: bf16[256,128], index: 3, kind: input, shape index: {}]   ;;  %s1922_s4 = inlined_call_operand.hbm [shape: f32[1,128], index: 4, kind: input, shape index: {}]   ;;  %s1923_s5 = inlined_call_operand.hbm [shape: f32[256,128], index: 5, kind: output, shape index: {}]  }
   0x1   :  { %12 = vsyncpa [#allocation3 + $0x1], 0 }
   0x2   :  { %13 = vsyncpa [#allocation6], 0 }
   0x3   :  { %14 = vsyncpa [#allocation9], 0 }
   0x4   :  { %15 = vsyncpa [#allocation4], 0 }
   0x5   :  { %17 = vsyncpa [#allocation4 + $0x1], 0  ;;  %s1538_s18 = smov 0   ;;  %s1540_s19 = smov 0  }
   0x6   :  { %s1542_s20 = smov 0   ;;  %s1544_s21 = smov 0  }
   0x7 LB: > { %s1559_s22 = sadd.s32 4294967295, %s1493_s21   ;;  %s1006_s23 = sadd.s32 4294967294, %s1493_s21   ;;  %s1493_s21 = sphi %s1544_s21, %s1946_s21   ;;  %s1489_s20 = sphi %s1542_s20, %s1945_s20   ;;  %s1485_s19 = sphi %s1540_s19, %s1944_s19   ;;  %s1481_s18 = sphi %s1538_s18, %s1943_s18  }
   0x8   : > { %p43_p0 = scmp.ne.s32.totalorder %s1485_s19, %s1481_s18  ;;  %p1924_p1 = scmp.eq.s32.totalorder %s1559_s22, 0 }
   0x9   : > { %p157_p3 = scmp.eq.s32.totalorder %s1006_s23, 1  ;;  %p1007_p5 = scmp.ge.s32.totalorder %s1493_s21, 1 }
   0xa   : > { %p1568_p4 = por %p1924_p1, %p43_p0  ;;  %p164_p7 = scmp.lt.s32.totalorder %s1493_s21, 3 }
   0xb   : > { %p1573_p6 = por %p157_p3, %p43_p0  ;;  %s1495_s27 = smov [#allocation5]  }
   0xc   : > { %s1927_s24 = scalar_select %p1568_p4, 1, 0 }
   0xd   : > { %s1928_s25 = scalar_select %p1573_p6, 1, 0 }
   0xe   : > { %p1578_p8 = pnand %p1007_p5, %p164_p7  ;;  %s176_s28 = sshll.u32 %s1495_s27, 4  ;;  %s1582_s28 = int_to_ptr.vmem [resolvable:$true] %s176_s28 }
   0xf   : > { %s1496_s30 = smov [#allocation8]   ;;  %s1277_s9 = scalar_lea.hbm %s1919_s1, 2048 }
  0x10   : > { %s1929_s26 = scalar_select %p1578_p8, 1, 0 }
  0x11   : > { %p1155_p9 = pneg %p1578_p8  ;;  %s200_s6 = sshll.u32 %s1496_s30, 4  ;;  %s1593_s6 = int_to_ptr.vmem [resolvable:$true] %s200_s6 }
  0x12   : > { %p1278_p12 = scmp.ne.s32.totalorder %s1919_s1, %s1277_s9  ;;  %p1284_p5 = scmp.lt.u32.totalorder %s1277_s9, %s1919_s1 }
  0x13   : > { %p1589_p11 = pnand %p1155_p9, %p1924_p1 }
  0x15   : > { %p1603_p13 = pneg %p1589_p11 }
  0x17   : > { %p1280_p0 = pnand %p1603_p13, %p1278_p12 }
  0x19   : > { %p1281_p3 = pneg %p1280_p0 }
  0x1b   : > { %p1286_p7 = pnand %p1284_p5, %p1281_p3 }
  0x1d   : > { %1289 = shalt.err (!%p1286_p7)
}
  0x1e   : > { %s1290_s15 = scalar_lea.vmem %s1582_s28, 2048  ;;  %p1298_p2 = scmp.lt.s32.totalorder %s1582_s28, %s1582_s28 }
  0x1f   : > { %p1291_p9 = scmp.ne.s32.totalorder %s1582_s28, %s1290_s15  ;;  %p1299_p6 = scmp.lt.s32.totalorder %s1290_s15, %s1290_s15 }
  0x21   : > { %p1293_p10 = pnand %p1291_p9, %p1603_p13  ;;  %p1300_p12 = por %p1299_p6, %p1298_p2 }
  0x23   : > { %p1294_p1 = pneg %p1293_p10 }
  0x25   : > { %p1301_p0 = pnand %p1300_p12, %p1294_p1 }
  0x27   : > { %1304 = shalt.err (!%p1301_p0)
}
  0x28   : > { %s1497_s16 = smov 128   ;;  %s1498_s17 = smov 8  }
  0x29   : > { %1158 = dma.hbm_to_vmem [thread:$0]  (!%p1589_p11), %s1919_s1, 2048, %s1582_s28, [#allocation6], %s1497_s16, %s1497_s16, %s1498_s17  }
  0x2a   : > { %s1305_s8 = scalar_lea.hbm %s1921_s3, 2048 }
  0x2b   : > { %p1306_p2 = scmp.ne.s32.totalorder %s1921_s3, %s1305_s8  ;;  %p1312_p10 = scmp.lt.u32.totalorder %s1305_s8, %s1921_s3 }
  0x2d   : > { %p1308_p1 = pnand %p1306_p2, %p1603_p13 }
  0x2f   : > { %p1309_p6 = pneg %p1308_p1 }
  0x31   : > { %p1314_p3 = pnand %p1312_p10, %p1309_p6 }
  0x33   : > { %1317 = shalt.err (!%p1314_p3)
}
  0x34   : > { %s1318_s28 = scalar_lea.vmem %s1593_s6, 2048  ;;  %p1326_p12 = scmp.lt.s32.totalorder %s1593_s6, %s1593_s6 }
  0x35   : > { %p1319_p5 = scmp.ne.s32.totalorder %s1593_s6, %s1318_s28  ;;  %p1327_p0 = scmp.lt.s32.totalorder %s1318_s28, %s1318_s28 }
  0x37   : > { %p1321_p7 = pnand %p1319_p5, %p1603_p13  ;;  %p1328_p2 = por %p1327_p0, %p1326_p12 }
  0x39   : > { %p1322_p9 = pneg %p1321_p7 }
  0x3b   : > { %p1329_p1 = pnand %p1328_p2, %p1322_p9 }
  0x3d   : > { %1332 = shalt.err (!%p1329_p1)
}
  0x3e   : > { %s1499_s14 = smov 64   ;;  %s1500_s15 = smov 4  }
  0x3f   : > { %1164 = dma.hbm_to_vmem [thread:$0]  (!%p1589_p11), %s1921_s3, 2048, %s1593_s6, [#allocation9], %s1499_s14, %s1499_s14, %s1500_s15  }
  0x40   : > { %s1501_s23 = smov [#allocation7]   ;;  %s1502_s30 = smov [#allocation10]  }
  0x41   : > { %s190_s27 = sshll.u32 %s1501_s23, 4  ;;  %s214_s7 = sshll.u32 %s1502_s30, 4  ;;  %s191_s27 = int_to_ptr.vmem [resolvable:$true] %s190_s27  ;;  %s1650_s7 = int_to_ptr.vmem [resolvable:$true] %s214_s7 }
  0x42   : > { %s1333_s10 = scalar_lea.hbm %s1920_s2, 32 }
  0x43   : > { %p1334_p6 = scmp.ne.s32.totalorder %s1920_s2, %s1333_s10  ;;  %p1340_p5 = scmp.lt.u32.totalorder %s1333_s10, %s1920_s2 }
  0x45   : > { %p1336_p10 = pnand %p1334_p6, %p1603_p13 }
  0x47   : > { %p1337_p3 = pneg %p1336_p10 }
  0x49   : > { %p1342_p7 = pnand %p1340_p5, %p1337_p3 }
  0x4b   : > { %1345 = shalt.err (!%p1342_p7)
}
  0x4c   : > { %s1346_s16 = scalar_lea.vmem %s191_s27, 32  ;;  %p1354_p2 = scmp.lt.s32.totalorder %s191_s27, %s191_s27 }
  0x4d   : > { %p1347_p9 = scmp.ne.s32.totalorder %s191_s27, %s1346_s16  ;;  %p1355_p1 = scmp.lt.s32.totalorder %s1346_s16, %s1346_s16 }
  0x4f   : > { %p1349_p12 = pnand %p1347_p9, %p1603_p13  ;;  %p1356_p4 = por %p1355_p1, %p1354_p2 }
  0x51   : > { %p1350_p0 = pneg %p1349_p12 }
  0x53   : > { %p1357_p8 = pnand %p1356_p4, %p1350_p0 }
  0x55   : > { %1360 = shalt.err (!%p1357_p8)
}
  0x56   : > { %1161 = dma.hbm_to_vmem [thread:$0]  (!%p1589_p11), %s1920_s2, 32, %s191_s27, [#allocation6]  }
  0x57   : > { %s1361_s9 = scalar_lea.hbm %s1922_s4, 16 }
  0x58   : > { %p1362_p6 = scmp.ne.s32.totalorder %s1922_s4, %s1361_s9  ;;  %p1368_p4 = scmp.lt.u32.totalorder %s1361_s9, %s1922_s4 }
  0x5a   : > { %p1364_p10 = pnand %p1362_p6, %p1603_p13 }
  0x5c   : > { %p1365_p3 = pneg %p1364_p10 }
  0x5e   : > { %p1370_p8 = pnand %p1368_p4, %p1365_p3 }
  0x60   : > { %1373 = shalt.err (!%p1370_p8)
}
  0x61   : > { %s1374_s27 = scalar_lea.vmem %s1650_s7, 16  ;;  %s1381_s6 = scalar_lea.vmem %s1650_s7, 32 }
  0x62   : > { %p1375_p5 = scmp.ne.s32.totalorder %s1650_s7, %s1374_s27  ;;  %p1382_p12 = scmp.lt.s32.totalorder %s1650_s7, %s1650_s7 }
  0x63   : > { %p1383_p0 = scmp.lt.s32.totalorder %s1381_s6, %s1374_s27 }
  0x64   : > { %p1377_p7 = pnand %p1375_p5, %p1603_p13 }
  0x65   : > { %p1384_p2 = por %p1383_p0, %p1382_p12 }
  0x66   : > { %p1378_p9 = pneg %p1377_p7 }
  0x68   : > { %p1385_p1 = pnand %p1384_p2, %p1378_p9 }
  0x6a   : > { %1388 = shalt.err (!%p1385_p1)
}
  0x6b   : > { %1167 = dma.hbm_to_vmem [thread:$0]  (!%p1589_p11), %s1922_s4, 16, %s1650_s7, [#allocation9]  }
  0x6c   : > { %s1695_s12 = sadd.s32 1, %s1493_s21   ;;  %s30_s23 = sadd.s32 1, %s1489_s20 }
  0x6d   : > { %s27_s29 = ssub.s32 %s1493_s21, %s1695_s12  ;;  %p37_p6 = scmp.ne.s32.totalorder %s1489_s20, %s1485_s19 }
  0x6e   : > { %p28_p13 = scmp.eq.s32.totalorder %s27_s29, 0  ;;  %p38_p10 = scmp.eq.s32.totalorder %s1493_s21, 0 }
  0x6f   : > { %p1932_p4 = scmp.eq.s32.totalorder %s1559_s22, 1  ;;  %p1180_p5 = scmp.lt.s32.totalorder %s1493_s21, 2 }
  0x70   : > { %s1704_s30 = scalar_select %p28_p13, %s1489_s20, %s30_s23  }
  0x71   : > { %p39_p3 = por %p38_p10, %p37_p6  ;;  %p1708_p8 = por %p1932_p4, %p37_p6 }
  0x72   : > { %s225_s9 = sand.u32 1, %s1489_s20   ;;  %s1069_s7 = sshll.u32 %s1493_s21, 10 }
  0x73   : > { %s1013_s10 = sshll.u32 %s225_s9, 6  ;;  %s1718_s28 = scalar_lea.hbm %s1918_s0, %s1069_s7 }
  0x74   : > { %s229_s27 = scalar_lea.vmem [#allocation2], %s1013_s10  ;;  %p1722_p11 = pnand %p1180_p5, %p39_p3 }
  0x75   : > { %s236_s6 = sshll.u32 %s229_s27, 4  ;;  %s1726_s17 = scalar_lea.sflag [#allocation3], %s225_s9  ;;  %s1720_s6 = int_to_ptr.vmem [resolvable:$true] %s236_s6 }
  0x76   : > { %s1389_s29 = scalar_lea.hbm %s1718_s28, 1024  ;;  %p1391_p9 = pneg %p1722_p11 }
  0x77   : > { %p1390_p7 = scmp.ne.s32.totalorder %s1718_s28, %s1389_s29  ;;  %s1394_s7 = scalar_lea.hbm %s1918_s0, 2048 }
  0x78   : > { %p1395_p2 = scmp.lt.u32.totalorder %s1718_s28, %s1918_s0  ;;  %p1396_p1 = scmp.lt.u32.totalorder %s1394_s7, %s1389_s29 }
  0x79   : > { %p1392_p12 = pnand %p1391_p9, %p1390_p7  ;;  %p1398_p6 = scmp.lt.u32.totalorder %s1389_s29, %s1718_s28 }
  0x7a   : > { %p1397_p13 = por %p1396_p1, %p1395_p2 }
  0x7b   : > { %p1393_p0 = pneg %p1392_p12 }
  0x7c   : > { %p1399_p10 = por %p1398_p6, %p1397_p13 }
  0x7e   : > { %p1400_p3 = pnand %p1399_p10, %p1393_p0 }
  0x80   : > { %1403 = shalt.err (!%p1400_p3)
}
  0x81   : > { %s1404_s9 = scalar_lea.vmem %s1720_s6, 1024  ;;  %s1503_s27 = smov [#allocation2]  }
  0x82   : > { %p1405_p4 = scmp.ne.s32.totalorder %s1720_s6, %s1404_s9  ;;  %s1409_s23 = sshll.u32 %s1503_s27, 4  ;;  %s1410_s23 = int_to_ptr.vmem [resolvable:$false] %s1409_s23 }
  0x83   : > { %s1411_s10 = scalar_lea.vmem %s1410_s23, 2048  ;;  %p1412_p12 = scmp.lt.s32.totalorder %s1720_s6, %s1410_s23 }
  0x84   : > { %p1407_p5 = pnand %p1405_p4, %p1391_p9  ;;  %p1413_p2 = scmp.lt.s32.totalorder %s1411_s10, %s1404_s9 }
  0x86   : > { %p1408_p7 = pneg %p1407_p5  ;;  %p1414_p1 = por %p1413_p2, %p1412_p12 }
  0x88   : > { %p1415_p13 = pnand %p1414_p1, %p1408_p7 }
  0x8a   : > { %1418 = shalt.err (!%p1415_p13)
}
  0x8b   : > { %1171 = dma.hbm_to_vmem [thread:$0]  (!%p1722_p11), %s1718_s28, 1024, %s1720_s6, %s1726_s17, %s1499_s14, %s1499_s14, %s1500_s15  }
  0x8c   : > { %p1935_p9 = scmp.ne.s32.totalorder %s1929_s26, 0 }
  0x8d   : > { %s1760_s29 = sand.u32 (!%p1935_p9), 1, %s1485_s19   ;;  %p1936_p0 = scmp.ne.s32.totalorder (!%p1935_p9), %s1927_s24, 0 }
  0x8e   : > { %248 = sbr.rel (%p1935_p9) target bundleno = 702 (0x2be), region = 40  ;;  %s1017_s7 = sshll.u32 (!%p1935_p9), %s1760_s29, 6 }
  0x8f   : > { %s251_s11 = scalar_lea.sflag (!%p1935_p9), [#allocation3], %s1760_s29  ;;  %s1764_s13 = scalar_lea.vmem (!%p1935_p9), [#allocation2], %s1017_s7 }
  0x95   : > { %1464 = dma.done.wait (%p1936_p0), %s251_s11, 1024  }
  0x96   : > { %1466 = vsyncadd (%p1936_p0), %s251_s11, 4294966272  ;;  %p1937_p11 = scmp.eq.s32.totalorder %s1559_s22, 0 }
  0x98   : > { %1468 = dma.done.wait (%p1937_p11), [#allocation6], 2080   ;;  %p1938_p6 = pmov %p1937_p11 }
  0x9a   : > { %1470 = vsyncadd (%p1938_p6), [#allocation6], 4294965216  ;;  %p1939_p10 = pmov %p1938_p6 }
  0x9b   : > { %p1940_p3 = pmov %p1938_p6 }
  0x9c   : > { %1472 = dma.done.wait (%p1939_p10), [#allocation9], 2064  }
  0x9d   : > { %1474 = vsyncadd (%p1940_p3), [#allocation9], 4294965232  ;;  %v1504_v0 = vmov 0   ;;  %v1229_v1 = vld [vmem:[#allocation5 + $0x4] ss:$8 sps:$4 sm:$0xff]   ;;  %v1265_v19 = vld [vmem:[#allocation8 + $0x50] sm:$0xff]   ;;  %v334_v41 = vlaneseq }
  0x9e   : > { %504 = vmatprep.mubr.bf16.mxu0 %v1504_v0  ;;  %v1231_v2 = vld [vmem:[#allocation5] ss:$8 sps:$4 sm:$0xff]   ;;  %472 = vmatprep.subr.bf16.mxu0 %v1229_v1  ;;  %v1232_v3 = vld [vmem:[#allocation5 + $0x14] ss:$8 sps:$4 sm:$0xff]   ;;  %v1234_v4 = vld [vmem:[#allocation5 + $0x10] ss:$8 sps:$4 sm:$0xff]  }
  0x9f   : > { %473 = vmatpush1.bf16.msra.mxu0 %v1231_v2  ;;  %v1235_v5 = vld [vmem:[#allocation5 + $0x24] ss:$8 sps:$4 sm:$0xff]   ;;  %v1237_v6 = vld [vmem:[#allocation5 + $0x20] ss:$8 sps:$4 sm:$0xff]   ;;  %v1238_v7 = vld [vmem:[#allocation5 + $0x34] ss:$8 sps:$4 sm:$0xff]  }
  0xa0   : > { %474 = vmatprep.subr.bf16.mxu0 %v1232_v3  ;;  %v1240_v8 = vld [vmem:[#allocation5 + $0x30] ss:$8 sps:$4 sm:$0xff]   ;;  %v1241_v9 = vld [vmem:[#allocation5 + $0x44] ss:$8 sps:$4 sm:$0xff]   ;;  %v1243_v10 = vld [vmem:[#allocation5 + $0x40] ss:$8 sps:$4 sm:$0xff]  }
  0xa1   : > { %v1244_v11 = vld [vmem:[#allocation5 + $0x54] ss:$8 sps:$4 sm:$0xff]   ;;  %v1246_v12 = vld [vmem:[#allocation5 + $0x50] ss:$8 sps:$4 sm:$0xff]   ;;  %v1247_v13 = vld [vmem:[#allocation5 + $0x64] ss:$8 sps:$4 sm:$0xff]  }
  0xa2   : > { %v1261_v14 = vld [vmem:[#allocation8 + $0x40] sm:$0xff]   ;;  %v1263_v17 = vld [vmem:[#allocation8 + $0x48] sm:$0xff]   ;;  %v1250_v20 = vld [vmem:[#allocation5 + $0x74] ss:$8 sps:$4 sm:$0xff]   ;;  %v335_v42 = vshrl.u32 %v334_v41, 7  ;;  %s1022_s24 = sshll.u32 %s1760_s29, 7 }
  0xa3   : > { %475 = vmatpush1.bf16.msra.mxu0 %v1234_v4  ;;  %v1262_v15 = vld [vmem:[#allocation8] sm:$0xff]   ;;  %1071 = vmatprep.subr.bf16.mxu1 %v1261_v14  ;;  %v1264_v18 = vld [vmem:[#allocation8 + $0x8] sm:$0xff]   ;;  %v1266_v22 = vld [vmem:[#allocation8 + $0x10] sm:$0xff]   ;;  %s1834_s26 = scalar_lea.vmem [#allocation11], %s1022_s24  ;;  %s1070_s14 = sshll.u32 %s1559_s22, 11 }
  0xa4   : > { %476 = vmatprep.subr.bf16.mxu0 %v1235_v5  ;;  %v1249_v16 = vld [vmem:[#allocation5 + $0x60] ss:$8 sps:$4 sm:$0xff]   ;;  %1072 = vmatpush3.bf16.msra.mxu1 %v1262_v15  ;;  %v1252_v21 = vld [vmem:[#allocation5 + $0x70] ss:$8 sps:$4 sm:$0xff]   ;;  %v336_v43 = vsub.s32 0, %v335_v42  ;;  %v340_v45 = vsub.s32 1, %v335_v42  ;;  %s1869_s16 = scalar_lea.hbm %s1923_s5, %s1070_s14 }
  0xa5   : > { %1073 = vmatprep.subr.bf16.mxu1 %v1263_v17  ;;  %v1267_v23 = vld [vmem:[#allocation8 + $0x58] sm:$0xff]   ;;  %v1269_v26 = vld [vmem:[#allocation8 + $0x60] sm:$0xff]   ;;  %v1271_v28 = vld [vmem:[#allocation8 + $0x68] sm:$0xff]   ;;  %s895_s15 = sshll.u32 %s1834_s26, 4  ;;  %s882_s22 = scalar_lea.sflag [#allocation4], %s1760_s29  ;;  %s1871_s15 = int_to_ptr.vmem [resolvable:$true] %s895_s15 }
  0xa6   : > { %v1253_v24 = vld [vmem:[%s1764_s13] sm:$0xff]   ;;  %v1254_v29 = vld [vmem:[%s1764_s13 + $0x8] sm:$0xff]   ;;  %v1255_v30 = vld [vmem:[%s1764_s13 + $0x10] sm:$0xff]   ;;  %s1419_s17 = scalar_lea.vmem %s1871_s15, 2048  ;;  %s1505_s9 = smov [#allocation11]  }
  0xa7   : > { %477 = vmatpush1.bf16.msra.mxu0 %v1237_v6  ;;  %v1268_v25 = vld [vmem:[#allocation8 + $0x18] sm:$0xff]   ;;  %v1270_v27 = vld [vmem:[#allocation8 + $0x20] sm:$0xff]   ;;  %v1259_v34 = vld [vmem:[%s1764_s13 + $0x30] sm:$0xff]   ;;  %p1420_p4 = scmp.ne.s32.totalorder %s1871_s15, %s1419_s17  ;;  %s1423_s27 = sshll.u32 %s1505_s9, 4  ;;  %s1424_s27 = int_to_ptr.vmem [resolvable:$false] %s1423_s27 }
  0xa8   : > { %478 = vmatprep.subr.bf16.mxu0 %v1238_v7  ;;  %1074 = vmatpush3.bf16.msra.mxu1 %v1264_v18  ;;  %v1256_v31 = vld [vmem:[%s1764_s13 + $0x18] sm:$0xff]   ;;  %v1257_v32 = vld [vmem:[%s1764_s13 + $0x20] sm:$0xff]   ;;  %v1258_v33 = vld [vmem:[%s1764_s13 + $0x28] sm:$0xff]   ;;  %s1425_s23 = scalar_lea.vmem %s1424_s27, 4096  ;;  %p1426_p12 = scmp.lt.s32.totalorder %s1871_s15, %s1424_s27 }
  0xa9   : > { %1075 = vmatprep.subr.bf16.mxu1 %v1265_v19  ;;  %v1260_v35 = vld [vmem:[%s1764_s13 + $0x38] sm:$0xff]   ;;  %v1272_v36 = vld [vmem:[#allocation8 + $0x28] sm:$0xff]   ;;  %v332_v44 = vld [vmem:[#allocation7] sm:$0x3]  ;;  %p1421_p5 = pnand %p1420_p4, %p1708_p8  ;;  %p1427_p2 = scmp.lt.s32.totalorder %s1425_s23, %s1419_s17 }
  0xaa   : > { %v1273_v37 = vld [vmem:[#allocation8 + $0x70] sm:$0xff]   ;;  %v1275_v39 = vld [vmem:[#allocation8 + $0x78] sm:$0xff]   ;;  %v1794_v46 = vrot.slane %v332_v44, %v336_v43  ;;  %v1796_v47 = vrot.slane %v332_v44, %v340_v45 }
  0xab   : > { %479 = vmatpush1.bf16.msra.mxu0 %v1240_v8  ;;  %v1274_v38 = vld [vmem:[#allocation8 + $0x30] sm:$0xff]   ;;  %v1276_v40 = vld [vmem:[#allocation8 + $0x38] sm:$0xff]   ;;  %p1422_p7 = pneg %p1421_p5  ;;  %p1428_p1 = por %p1427_p2, %p1426_p12 }
  0xac   : > { %480 = vmatprep.subr.bf16.mxu0 %v1241_v9  ;;  %1076 = vmatpush3.bf16.msra.mxu1 %v1266_v22 }
  0xad   : > { %1077 = vmatprep.subr.bf16.mxu1 %v1267_v23  ;;  %p1429_p13 = pnand %p1428_p1, %p1422_p7 }
  0xaf   : > { %481 = vmatpush1.bf16.msra.mxu0 %v1243_v10 }
  0xb0   : > { %482 = vmatprep.subr.bf16.mxu0 %v1244_v11  ;;  %1078 = vmatpush3.bf16.msra.mxu1 %v1268_v25 }
  0xb1   : > { %1079 = vmatprep.subr.bf16.mxu1 %v1269_v26 }
  0xb3   : > { %483 = vmatpush1.bf16.msra.mxu0 %v1246_v12 }
  0xb4   : > { %484 = vmatprep.subr.bf16.mxu0 %v1247_v13  ;;  %1080 = vmatpush3.bf16.msra.mxu1 %v1270_v27 }
  0xb5   : > { %1081 = vmatprep.subr.bf16.mxu1 %v1271_v28 }
  0xb7   : > { %485 = vmatpush1.bf16.msra.mxu0 %v1249_v16 }
  0xb8   : > { %486 = vmatprep.subr.bf16.mxu0 %v1250_v20  ;;  %1082 = vmatpush3.bf16.msra.mxu1 %v1272_v36 }
  0xb9   : > { %1083 = vmatprep.subr.bf16.mxu1 %v1273_v37 }
  0xbb   : > { %487 = vmatpush1.bf16.msra.mxu0 %v1252_v21 }
  0xbc   : > { %1084 = vmatpush3.bf16.msra.mxu1 %v1274_v38 }
  0xbd   : > { %1085 = vmatprep.subr.bf16.mxu1 %v1275_v39 }
  0xbe   : > { %505 = vmatmul.mubr.bf16.vlgmr.msra.gmra.mrb[0].mxu0 %v1253_v24 }
  0xbf   : > { %514 = vmatprep.mubr.bf16.mxu0 %v1504_v0 }
  0xc0   : > { %1086 = vmatpush3.bf16.msra.mxu1 %v1276_v40 }
  0xc6   : > { %515 = vmatmul.mubr.bf16.gmra.mrb[4].mxu0 %v1254_v29 }
  0xc7   : > { %524 = vmatprep.mubr.bf16.mxu0 %v1504_v0 }
  0xce   : > { %525 = vmatmul.mubr.bf16.gmra.mrb[8].mxu0 %v1255_v30 }
  0xcf   : > { %534 = vmatprep.mubr.bf16.mxu0 %v1504_v0 }
  0xd6   : > { %535 = vmatmul.mubr.bf16.gmra.mrb[12].mxu0 %v1256_v31 }
  0xd7   : > { %544 = vmatprep.mubr.bf16.mxu0 %v1504_v0 }
  0xde   : > { %545 = vmatmul.mubr.bf16.gmra.mrb[16].mxu0 %v1257_v32 }
  0xdf   : > { %554 = vmatprep.mubr.bf16.mxu0 %v1504_v0 }
  0xe6   : > { %555 = vmatmul.mubr.bf16.gmra.mrb[20].mxu0 %v1258_v33 }
  0xe7   : > { %564 = vmatprep.mubr.bf16.mxu0 %v1504_v0 }
  0xee   : > { %565 = vmatmul.mubr.bf16.gmra.mrb[24].mxu0 %v1259_v34 }
  0xef   : > { %574 = vmatprep.mubr.bf16.mxu0 %v1504_v0 }
  0xf6   : > { %575 = vmatmul.mubr.bf16.gmra.mrb[28].mxu0 %v1260_v35 }
 0x191   : > { %v506_v48 = vpop.f32.mrb[0].mxu0 }
 0x192   : > { %v507_v49 = vadd.f32 %v506_v48, %v1794_v46  ;;  %v508_v50 = vpop.f32.mrb[1].mxu0 }
 0x193   : > { %v509_v51 = vadd.f32 %v508_v50, %v1796_v47  ;;  %v510_v52 = vpop.f32.mrb[2].mxu0 }
 0x194   : > { %v511_v53 = vadd.f32 %v510_v52, %v1794_v46  ;;  %v512_v54 = vpop.f32.mrb[3].mxu0  ;;  %v585_v56 = vmax.f32 %v507_v49, 0.0 }
 0x195   : > { %v513_v55 = vadd.f32 %v512_v54, %v1796_v47  ;;  %v586_v58 = vmax.f32 %v509_v51, 0.0 }
 0x196   : > { %v587_v57 = vmax.f32 %v511_v53, 0.0 }
 0x197   : > { %v588_v59 = vmax.f32 %v513_v55, 0.0 }
 0x198   : > { %v617_v60 = vpack.c.bf16 %v587_v57, %v585_v56 }
 0x199   : > { %v516_v61 = vpop.f32.mrb[4].mxu0  ;;  %v618_v62 = vpack.c.bf16 %v588_v59, %v586_v58 }
 0x19a   : > { %v517_v63 = vadd.f32 %v516_v61, %v1794_v46  ;;  %v518_v0 = vpop.f32.mrb[5].mxu0 }
 0x19b   : > { %v519_v1 = vadd.f32 %v518_v0, %v1796_v47  ;;  %v520_v2 = vpop.f32.mrb[6].mxu0  ;;  %800 = vmatprep.mubr.bf16.mxu1 %v618_v62 }
 0x19c   : > { %v521_v3 = vadd.f32 %v520_v2, %v1794_v46  ;;  %v522_v4 = vpop.f32.mrb[7].mxu0  ;;  %801 = vmatmul.mubr.bf16.vlgmr.msra.gmra.mrb[0].mxu1 %v617_v60  ;;  %v589_v6 = vmax.f32 %v517_v63, 0.0 }
 0x19d   : > { %v523_v5 = vadd.f32 %v522_v4, %v1796_v47  ;;  %v590_v8 = vmax.f32 %v519_v1, 0.0 }
 0x19e   : > { %v591_v7 = vmax.f32 %v521_v3, 0.0 }
 0x19f   : > { %v592_v9 = vmax.f32 %v523_v5, 0.0 }
 0x1a0   : > { %v619_v10 = vpack.c.bf16 %v591_v7, %v589_v6 }
 0x1a1   : > { %v620_v11 = vpack.c.bf16 %v592_v9, %v590_v8  ;;  %v526_v12 = vpop.f32.mrb[8].mxu0 }
 0x1a2   : > { %v527_v13 = vadd.f32 %v526_v12, %v1794_v46  ;;  %v528_v14 = vpop.f32.mrb[9].mxu0 }
 0x1a3   : > { %v529_v15 = vadd.f32 %v528_v14, %v1796_v47  ;;  %v530_v16 = vpop.f32.mrb[10].mxu0  ;;  %808 = vmatprep.mubr.bf16.mxu1 %v620_v11 }
 0x1a4   : > { %v531_v17 = vadd.f32 %v530_v16, %v1794_v46  ;;  %v532_v18 = vpop.f32.mrb[11].mxu0  ;;  %809 = vmatmul.mubr.bf16.gmra.mrb[4].mxu1 %v619_v10  ;;  %v593_v20 = vmax.f32 %v527_v13, 0.0 }
 0x1a5   : > { %v533_v19 = vadd.f32 %v532_v18, %v1796_v47  ;;  %v594_v22 = vmax.f32 %v529_v15, 0.0 }
 0x1a6   : > { %v595_v21 = vmax.f32 %v531_v17, 0.0 }
 0x1a7   : > { %v596_v23 = vmax.f32 %v533_v19, 0.0 }
 0x1a8   : > { %v621_v24 = vpack.c.bf16 %v595_v21, %v593_v20 }
 0x1a9   : > { %v622_v25 = vpack.c.bf16 %v596_v23, %v594_v22  ;;  %v536_v26 = vpop.f32.mrb[12].mxu0 }
 0x1aa   : > { %v537_v27 = vadd.f32 %v536_v26, %v1794_v46  ;;  %v538_v28 = vpop.f32.mrb[13].mxu0 }
 0x1ab   : > { %v539_v29 = vadd.f32 %v538_v28, %v1796_v47  ;;  %v540_v30 = vpop.f32.mrb[14].mxu0  ;;  %816 = vmatprep.mubr.bf16.mxu1 %v622_v25 }
 0x1ac   : > { %v541_v31 = vadd.f32 %v540_v30, %v1794_v46  ;;  %v542_v32 = vpop.f32.mrb[15].mxu0  ;;  %817 = vmatmul.mubr.bf16.gmra.mrb[8].mxu1 %v621_v24  ;;  %v597_v34 = vmax.f32 %v537_v27, 0.0 }
 0x1ad   : > { %v543_v33 = vadd.f32 %v542_v32, %v1796_v47  ;;  %v598_v36 = vmax.f32 %v539_v29, 0.0 }
 0x1ae   : > { %v599_v35 = vmax.f32 %v541_v31, 0.0 }
 0x1af   : > { %v600_v37 = vmax.f32 %v543_v33, 0.0 }
 0x1b0   : > { %v623_v38 = vpack.c.bf16 %v599_v35, %v597_v34  ;;  %v1831_v35 = vld [vmem:[#allocation10] ss:$0 sm:$0xff] }
 0x1b1   : > { %v624_v39 = vpack.c.bf16 %v600_v37, %v598_v36  ;;  %v546_v40 = vpop.f32.mrb[16].mxu0 }
 0x1b2   : > { %v547_v41 = vadd.f32 %v546_v40, %v1794_v46  ;;  %v548_v42 = vpop.f32.mrb[17].mxu0 }
 0x1b3   : > { %v549_v43 = vadd.f32 %v548_v42, %v1796_v47  ;;  %v550_v44 = vpop.f32.mrb[18].mxu0  ;;  %824 = vmatprep.mubr.bf16.mxu1 %v624_v39 }
 0x1b4   : > { %v551_v45 = vadd.f32 %v550_v44, %v1794_v46  ;;  %v552_v48 = vpop.f32.mrb[19].mxu0  ;;  %825 = vmatmul.mubr.bf16.gmra.mrb[12].mxu1 %v623_v38  ;;  %v601_v50 = vmax.f32 %v547_v41, 0.0 }
 0x1b5   : > { %v553_v49 = vadd.f32 %v552_v48, %v1796_v47  ;;  %v602_v52 = vmax.f32 %v549_v43, 0.0 }
 0x1b6   : > { %v603_v51 = vmax.f32 %v551_v45, 0.0 }
 0x1b7   : > { %v604_v53 = vmax.f32 %v553_v49, 0.0 }
 0x1b8   : > { %v625_v54 = vpack.c.bf16 %v603_v51, %v601_v50 }
 0x1b9   : > { %v626_v55 = vpack.c.bf16 %v604_v53, %v602_v52  ;;  %v556_v56 = vpop.f32.mrb[20].mxu0 }
 0x1ba   : > { %v557_v57 = vadd.f32 %v556_v56, %v1794_v46  ;;  %v558_v58 = vpop.f32.mrb[21].mxu0 }
 0x1bb   : > { %v559_v59 = vadd.f32 %v558_v58, %v1796_v47  ;;  %v560_v60 = vpop.f32.mrb[22].mxu0  ;;  %832 = vmatprep.mubr.bf16.mxu1 %v626_v55 }
 0x1bc   : > { %v561_v61 = vadd.f32 %v560_v60, %v1794_v46  ;;  %v562_v62 = vpop.f32.mrb[23].mxu0  ;;  %833 = vmatmul.mubr.bf16.gmra.mrb[16].mxu1 %v625_v54  ;;  %v605_v0 = vmax.f32 %v557_v57, 0.0 }
 0x1bd   : > { %v563_v63 = vadd.f32 %v562_v62, %v1796_v47  ;;  %v606_v2 = vmax.f32 %v559_v59, 0.0 }
 0x1be   : > { %v607_v1 = vmax.f32 %v561_v61, 0.0 }
 0x1bf   : > { %v608_v3 = vmax.f32 %v563_v63, 0.0 }
 0x1c0   : > { %v627_v4 = vpack.c.bf16 %v607_v1, %v605_v0 }
 0x1c1   : > { %v628_v5 = vpack.c.bf16 %v608_v3, %v606_v2  ;;  %v566_v6 = vpop.f32.mrb[24].mxu0 }
 0x1c2   : > { %v567_v7 = vadd.f32 %v566_v6, %v1794_v46  ;;  %v568_v8 = vpop.f32.mrb[25].mxu0 }
 0x1c3   : > { %v569_v9 = vadd.f32 %v568_v8, %v1796_v47  ;;  %v570_v10 = vpop.f32.mrb[26].mxu0  ;;  %840 = vmatprep.mubr.bf16.mxu1 %v628_v5 }
 0x1c4   : > { %v571_v11 = vadd.f32 %v570_v10, %v1794_v46  ;;  %v572_v12 = vpop.f32.mrb[27].mxu0  ;;  %841 = vmatmul.mubr.bf16.gmra.mrb[20].mxu1 %v627_v4  ;;  %v609_v14 = vmax.f32 %v567_v7, 0.0 }
 0x1c5   : > { %v573_v13 = vadd.f32 %v572_v12, %v1796_v47  ;;  %v610_v16 = vmax.f32 %v569_v9, 0.0 }
 0x1c6   : > { %v611_v15 = vmax.f32 %v571_v11, 0.0 }
 0x1c7   : > { %v612_v17 = vmax.f32 %v573_v13, 0.0 }
 0x1c8   : > { %v629_v18 = vpack.c.bf16 %v611_v15, %v609_v14 }
 0x1c9   : > { %v630_v19 = vpack.c.bf16 %v612_v17, %v610_v16  ;;  %v576_v20 = vpop.f32.mrb[28].mxu0 }
 0x1ca   : > { %v577_v21 = vadd.f32 %v576_v20, %v1794_v46  ;;  %v578_v22 = vpop.f32.mrb[29].mxu0 }
 0x1cb   : > { %v579_v23 = vadd.f32 %v578_v22, %v1796_v47  ;;  %v580_v24 = vpop.f32.mrb[30].mxu0  ;;  %848 = vmatprep.mubr.bf16.mxu1 %v630_v19 }
 0x1cc   : > { %v581_v25 = vadd.f32 %v580_v24, %v1794_v46  ;;  %v582_v26 = vpop.f32.mrb[31].mxu0  ;;  %849 = vmatmul.mubr.bf16.gmra.mrb[24].mxu1 %v629_v18  ;;  %v613_v28 = vmax.f32 %v577_v21, 0.0 }
 0x1cd   : > { %v583_v27 = vadd.f32 %v582_v26, %v1796_v47  ;;  %v614_v30 = vmax.f32 %v579_v23, 0.0 }
 0x1ce   : > { %v615_v29 = vmax.f32 %v581_v25, 0.0 }
 0x1cf   : > { %v616_v31 = vmax.f32 %v583_v27, 0.0 }
 0x1d0   : > { %v631_v32 = vpack.c.bf16 %v615_v29, %v613_v28 }
 0x1d1   : > { %v632_v33 = vpack.c.bf16 %v616_v31, %v614_v30 }
 0x1d3   : > { %856 = vmatprep.mubr.bf16.mxu1 %v632_v33 }
 0x1d4   : > { %857 = vmatmul.mubr.bf16.gmra.mrb[28].mxu1 %v631_v32 }
 0x26f   : > { %v1087_v34 = vpop.f32.mrb[0].mxu1 }
 0x270   : > { %v1088_v36 = vpop.f32.mrb[1].mxu1 }
 0x271   : > { %v1089_v37 = vadd.f32 %v1088_v36, %v1087_v34  ;;  %v1090_v38 = vpop.f32.mrb[2].mxu1 }
 0x272   : > { %v1091_v46 = vpop.f32.mrb[3].mxu1 }
 0x273   : > { %v803_v39 = vadd.f32 %v1089_v37, %v1831_v35  ;;  %v1092_v40 = vadd.f32 %v1091_v46, %v1090_v38 }
 0x275   : > { %865 = vst [vmem:[%s1834_s26] sm:$0xff] %v803_v39  ;;  %v806_v47 = vadd.f32 %v1092_v40, %v1831_v35 }
 0x277   : > { %866 = vst [vmem:[%s1834_s26 + $0x8] sm:$0xff] %v806_v47  ;;  %v1093_v41 = vpop.f32.mrb[4].mxu1 }
 0x278   : > { %v1094_v42 = vpop.f32.mrb[5].mxu1 }
 0x279   : > { %v1095_v43 = vadd.f32 %v1094_v42, %v1093_v41  ;;  %v1096_v44 = vpop.f32.mrb[6].mxu1 }
 0x27a   : > { %v1097_v45 = vpop.f32.mrb[7].mxu1 }
 0x27b   : > { %v811_v48 = vadd.f32 %v1095_v43, %v1831_v35  ;;  %v1098_v49 = vadd.f32 %v1097_v45, %v1096_v44 }
 0x27d   : > { %867 = vst [vmem:[%s1834_s26 + $0x10] sm:$0xff] %v811_v48  ;;  %v814_v50 = vadd.f32 %v1098_v49, %v1831_v35 }
 0x27f   : > { %868 = vst [vmem:[%s1834_s26 + $0x18] sm:$0xff] %v814_v50  ;;  %v1099_v51 = vpop.f32.mrb[8].mxu1 }
 0x280   : > { %v1100_v52 = vpop.f32.mrb[9].mxu1 }
 0x281   : > { %v1101_v53 = vadd.f32 %v1100_v52, %v1099_v51  ;;  %v1102_v54 = vpop.f32.mrb[10].mxu1 }
 0x282   : > { %v1103_v55 = vpop.f32.mrb[11].mxu1 }
 0x283   : > { %v819_v56 = vadd.f32 %v1101_v53, %v1831_v35  ;;  %v1104_v57 = vadd.f32 %v1103_v55, %v1102_v54 }
 0x285   : > { %869 = vst [vmem:[%s1834_s26 + $0x20] sm:$0xff] %v819_v56  ;;  %v822_v58 = vadd.f32 %v1104_v57, %v1831_v35 }
 0x287   : > { %870 = vst [vmem:[%s1834_s26 + $0x28] sm:$0xff] %v822_v58  ;;  %v1105_v59 = vpop.f32.mrb[12].mxu1 }
 0x288   : > { %v1106_v60 = vpop.f32.mrb[13].mxu1 }
 0x289   : > { %v1107_v61 = vadd.f32 %v1106_v60, %v1105_v59  ;;  %v1108_v62 = vpop.f32.mrb[14].mxu1 }
 0x28a   : > { %v1109_v63 = vpop.f32.mrb[15].mxu1 }
 0x28b   : > { %v827_v0 = vadd.f32 %v1107_v61, %v1831_v35  ;;  %v1110_v1 = vadd.f32 %v1109_v63, %v1108_v62 }
 0x28d   : > { %871 = vst [vmem:[%s1834_s26 + $0x30] sm:$0xff] %v827_v0  ;;  %v830_v2 = vadd.f32 %v1110_v1, %v1831_v35 }
 0x28f   : > { %872 = vst [vmem:[%s1834_s26 + $0x38] sm:$0xff] %v830_v2  ;;  %v1111_v3 = vpop.f32.mrb[16].mxu1 }
 0x290   : > { %v1112_v4 = vpop.f32.mrb[17].mxu1 }
 0x291   : > { %v1113_v5 = vadd.f32 %v1112_v4, %v1111_v3  ;;  %v1114_v6 = vpop.f32.mrb[18].mxu1 }
 0x292   : > { %v1115_v7 = vpop.f32.mrb[19].mxu1 }
 0x293   : > { %v835_v8 = vadd.f32 %v1113_v5, %v1831_v35  ;;  %v1116_v9 = vadd.f32 %v1115_v7, %v1114_v6 }
 0x295   : > { %873 = vst [vmem:[%s1834_s26 + $0x40] sm:$0xff] %v835_v8  ;;  %v838_v10 = vadd.f32 %v1116_v9, %v1831_v35 }
 0x297   : > { %874 = vst [vmem:[%s1834_s26 + $0x48] sm:$0xff] %v838_v10  ;;  %v1117_v11 = vpop.f32.mrb[20].mxu1 }
 0x298   : > { %v1118_v12 = vpop.f32.mrb[21].mxu1 }
 0x299   : > { %v1119_v13 = vadd.f32 %v1118_v12, %v1117_v11  ;;  %v1120_v14 = vpop.f32.mrb[22].mxu1 }
 0x29a   : > { %v1121_v15 = vpop.f32.mrb[23].mxu1 }
 0x29b   : > { %v843_v16 = vadd.f32 %v1119_v13, %v1831_v35  ;;  %v1122_v17 = vadd.f32 %v1121_v15, %v1120_v14 }
 0x29d   : > { %875 = vst [vmem:[%s1834_s26 + $0x50] sm:$0xff] %v843_v16  ;;  %v846_v18 = vadd.f32 %v1122_v17, %v1831_v35 }
 0x29f   : > { %876 = vst [vmem:[%s1834_s26 + $0x58] sm:$0xff] %v846_v18  ;;  %v1123_v19 = vpop.f32.mrb[24].mxu1 }
 0x2a0   : > { %v1124_v20 = vpop.f32.mrb[25].mxu1 }
 0x2a1   : > { %v1125_v21 = vadd.f32 %v1124_v20, %v1123_v19  ;;  %v1126_v22 = vpop.f32.mrb[26].mxu1 }
 0x2a2   : > { %v1127_v23 = vpop.f32.mrb[27].mxu1 }
 0x2a3   : > { %v851_v24 = vadd.f32 %v1125_v21, %v1831_v35  ;;  %v1128_v25 = vadd.f32 %v1127_v23, %v1126_v22 }
 0x2a5   : > { %877 = vst [vmem:[%s1834_s26 + $0x60] sm:$0xff] %v851_v24  ;;  %v854_v26 = vadd.f32 %v1128_v25, %v1831_v35 }
 0x2a7   : > { %878 = vst [vmem:[%s1834_s26 + $0x68] sm:$0xff] %v854_v26  ;;  %v1129_v27 = vpop.f32.mrb[28].mxu1 }
 0x2a8   : > { %v1130_v28 = vpop.f32.mrb[29].mxu1 }
 0x2a9   : > { %v1131_v29 = vadd.f32 %v1130_v28, %v1129_v27  ;;  %v1132_v30 = vpop.f32.mrb[30].mxu1 }
 0x2aa   : > { %v1133_v31 = vpop.f32.mrb[31].mxu1 }
 0x2ab   : > { %v859_v32 = vadd.f32 %v1131_v29, %v1831_v35  ;;  %v1134_v33 = vadd.f32 %v1133_v31, %v1132_v30 }
 0x2ad   : > { %879 = vst [vmem:[%s1834_s26 + $0x70] sm:$0xff] %v859_v32  ;;  %v862_v34 = vadd.f32 %v1134_v33, %v1831_v35 }
 0x2af   : > { %880 = vst [vmem:[%s1834_s26 + $0x78] sm:$0xff] %v862_v34 }
 0x2b0   : > { %1432 = shalt.err (!%p1429_p13)
}
 0x2b1   : > { %s1433_s10 = scalar_lea.hbm %s1869_s16, 2048  ;;  %s1437_s13 = scalar_lea.hbm %s1923_s5, 4096 }
 0x2b2   : > { %p1434_p9 = scmp.ne.s32.totalorder %s1869_s16, %s1433_s10  ;;  %p1438_p6 = scmp.lt.u32.totalorder %s1869_s16, %s1923_s5 }
 0x2b3   : > { %p1439_p10 = scmp.lt.u32.totalorder %s1437_s13, %s1433_s10  ;;  %p1441_p4 = scmp.lt.u32.totalorder %s1433_s10, %s1869_s16 }
 0x2b4   : > { %p1435_p0 = pnand %p1434_p9, %p1708_p8 }
 0x2b5   : > { %p1440_p3 = por %p1439_p10, %p1438_p6 }
 0x2b6   : > { %p1436_p11 = pneg %p1435_p0 }
 0x2b7   : > { %p1442_p5 = por %p1441_p4, %p1440_p3 }
 0x2b9   : > { %p1443_p7 = pnand %p1442_p5, %p1436_p11 }
 0x2bb   : > { %1446 = shalt.err (!%p1443_p7)
}
 0x2bc   : > { %s1506_s14 = smov 128   ;;  %s1507_s28 = smov 8  }
 0x2bd   : > { %1153 = dma.vmem_to_hbm [thread:$0]  (%p1708_p8), %s1871_s15, 2048, %s1869_s16, %s882_s22, %s1506_s14, %s1506_s14, %s1507_s28  }
 0x2be PF: > { %s910_s6 = sand.u32 1, %s1481_s18   ;;  %p1941_p12 = scmp.ne.s32.totalorder %s1928_s25, 0 }
 0x2bf   : > { %p1942_p2 = scmp.ge.s32.totalorder %s1493_s21, 2  ;;  %s911_s17 = scalar_lea.sflag [#allocation4], %s910_s6 }
 0x2c1   : > { %p1173_p1 = pnand %p1942_p2, %p1941_p12 }
 0x2c3   : > { %1476 = dma.done.wait (!%p1173_p1), %s911_s17, 2048  }
 0x2c4   : > { %1478 = vsyncadd (!%p1173_p1), %s911_s17, 4294965248  ;;  %p20_p13 = scmp.ge.s32.totalorder %s1695_s12, 4   ;;  %s1943_s18 = smov %s1485_s19 }
 0x2c5   : > { %s1944_s19 = smov %s1489_s20  ;;  %s1945_s20 = smov %s1704_s30 }
 0x2c6   : > { %s1946_s21 = smov %s1695_s12  ;;  %22 = sbr.rel (!%p20_p13) target bundleno = 7 (0x7), region = 101 }
 0x2cd   :  { %916 = vsyncpa [#allocation3], 1 }
 0x2ce   :  { %918 = vsyncpa [#allocation3 + $0x1], 1 }
 0x2cf   :  { %919 = vsyncpa [#allocation6], 1 }
 0x2d0   :  { %920 = vsyncpa [#allocation9], 1 }
 0x2d1   :  { %921 = vsyncpa [#allocation4], 1 }
 0x2d2   :  { %923 = vsyncpa [#allocation4 + $0x1], 1 }

</bundles_post_ra>
